<compile_context>
chip_gen: v6e
topology: v6e:2x2x1
jax: 0.10.0
libtpu: 0.0.40
codegen_flags: <defaults>
</compile_context>

<pallas_src>
import math

import jax
import jax.numpy as jnp
from jax.experimental import pallas as pl
from jax.experimental.pallas import tpu as pltpu


# ---------------------------------------------------------------------------
# Kernels
# ---------------------------------------------------------------------------
def _prelu_kernel_scalar(x_ref, p_ref, o_ref):
    # x_ref: (TR, L) VMEM tile; p_ref: (3,) SMEM = [thresh, neg_slope, pos_slope].
    shifted = x_ref[...] - p_ref[0]
    slope = jnp.where(shifted < 0, p_ref[1], p_ref[2])
    o_ref[...] = (slope * shifted).astype(o_ref.dtype)


def _prelu_kernel_vector(x_ref, p_ref, o_ref):
    # x_ref: (TR, L) VMEM tile; p_ref: (3, L) VMEM rows, broadcast over sublanes.
    shifted = x_ref[...] - p_ref[0:1, :]
    slope = jnp.where(shifted < 0, p_ref[1:2, :], p_ref[2:3, :])
    o_ref[...] = (slope * shifted).astype(o_ref.dtype)


# ---------------------------------------------------------------------------
# Wrapper
# ---------------------------------------------------------------------------
_BLOCK_BYTES = 2 * 1024 * 1024   # per-block cap: double-buffered in+out ~ 8 MiB
_TARGET_LANES = 2048             # aim for ~2K-wide lane-dense slabs


def _sublane_multiple(dtype):
    # f32 -> 8, bf16/f16 -> 16, int8/fp8 -> 32 (sublane packing requirement).
    itemsize = jnp.dtype(dtype).itemsize
    return max(8, 32 // itemsize)


def _choose_lane_width(total, unit, sub):
    """Pick slab width L (a multiple of `unit`, which is a multiple of 128).

    Prefer an L that divides `total` exactly (reshape stays a free view -> no
    pad copy) while leaving at least `sub` rows (full vregs). Returns
    (L, needs_pad).
    """
    max_k = max(1, _TARGET_LANES // unit)
    if total % unit == 0:
        best = unit
        for k in range(max_k, 0, -1):
            L = unit * k
            if total % L == 0:
                if total // L >= sub:
                    return L, False
                best = max(best, L)
        return best, False
    # Padding unavoidable (x.size not a multiple of the lane period).
    return unit * max_k, True


def parametric_relu(x, thresh, neg_slope, pos_slope):
    """Parametric ReLU forward, matching the PyTorch module's semantics."""
    orig_shape = x.shape
    dtype = x.dtype

    thresh = jnp.asarray(thresh).reshape(-1)
    neg_slope = jnp.asarray(neg_slope).reshape(-1)
    pos_slope = jnp.asarray(pos_slope).reshape(-1)
    P = thresh.shape[0]
    W = orig_shape[-1] if len(orig_shape) > 0 else 1

    total = int(x.size)
    scalar_params = (P == 1)
    if not scalar_params and P != W:
        raise ValueError("parameter shape must be 1 or x.shape[-1]")

    sub = _sublane_multiple(dtype)
    itemsize = jnp.dtype(dtype).itemsize

    # --- Lane-dense slab width L (multiple of 128; multiple of W if P == W) ---
    unit = 128 if scalar_params else math.lcm(W, 128)
    L, needs_pad = _choose_lane_width(total, unit, sub)

    rows = pl.cdiv(total, L)
    if needs_pad:
        xf = jnp.pad(x.reshape(-1), (0, rows * L - total))
        x2d = xf.reshape(rows, L)
    else:
        x2d = x.reshape(rows, L)   # free view: L divides total

    # --- Row-tile size TR: byte-capped, >= 4 grid steps when input allows ----
    if rows <= sub:
        TR = rows                                  # block == full row extent
    else:
        tr_cap = max(sub, (_BLOCK_BYTES // (L * itemsize)) // sub * sub)
        q = -(-rows // 4)                          # cdiv(rows, 4)
        tr_quarter = -(-q // sub) * sub            # round up to sublane multiple
        TR = max(sub, min(tr_cap, tr_quarter))
    grid = (pl.cdiv(rows, TR),)                    # ragged last block is masked

    x_spec = pl.BlockSpec((TR, L), lambda i: (i, 0))
    out_spec = pl.BlockSpec((TR, L), lambda i: (i, 0))

    if scalar_params:
        kernel = _prelu_kernel_scalar
        params = jnp.stack(
            [thresh[0], neg_slope[0], pos_slope[0]]).astype(jnp.float32)  # (3,)
        param_spec = pl.BlockSpec(memory_space=pltpu.MemorySpace.SMEM)
    else:
        kernel = _prelu_kernel_vector
        params = jnp.stack([thresh, neg_slope, pos_slope], axis=0).astype(dtype)
        params = jnp.tile(params, (1, L // W))                            # (3, L)
        param_spec = pl.BlockSpec((3, L), lambda i: (0, 0))

    out2d = pl.pallas_call(
        kernel,
        out_shape=jax.ShapeDtypeStruct((rows, L), dtype),
        grid=grid,
        in_specs=[x_spec, param_spec],
        out_specs=out_spec,
        compiler_params=pltpu.CompilerParams(
            dimension_semantics=("parallel",),
        ),
    )(x2d, params)

    if needs_pad:
        return out2d.reshape(-1)[:total].reshape(orig_shape)
    return out2d.reshape(orig_shape)


# ---------------------------------------------------------------------------
# Self-test
# ---------------------------------------------------------------------------
def _reference(x, thresh, neg_slope, pos_slope):
    shifted = x - thresh
    return jnp.where(shifted < 0, neg_slope * shifted, pos_slope * shifted)


if __name__ == "__main__":
    key = jax.random.PRNGKey(0)

    # Small NCHW conv-style input, matching the module's typical usage.
    N, C, H, W = 2, 4, 16, 16
    x = jax.random.normal(key, (N, C, H, W), dtype=jnp.float32)

    # ---- Case 1: default shape=1 parameters (SMEM-scalar path) ----
    thresh = jnp.full((1,), 0.1, dtype=jnp.float32)
    neg_slope = jnp.full((1,), 0.01, dtype=jnp.float32)
    pos_slope = jnp.full((1,), 1.0, dtype=jnp.float32)

    out = jax.block_until_ready(parametric_relu(x, thresh, neg_slope, pos_slope))
    ref = _reference(x, thresh, neg_slope, pos_slope)
    assert out.shape == x.shape and out.dtype == x.dtype
    assert jnp.allclose(out, ref, atol=1e-6, rtol=1e-6)

    # ---- Case 2: per-element parameters (shape == x.shape[-1], stacked-row path) ----
    k1, k2, k3 = jax.random.split(jax.random.PRNGKey(1), 3)
    thresh_w = 0.1 * jax.random.normal(k1, (W,), dtype=jnp.float32)
    neg_w = 0.05 * jax.random.normal(k2, (W,), dtype=jnp.float32)
    pos_w = 1.0 + 0.1 * jax.random.normal(k3, (W,), dtype=jnp.float32)

    out_w = jax.block_until_ready(parametric_relu(x, thresh_w, neg_w, pos_w))
    ref_w = _reference(x, thresh_w, neg_w, pos_w)
    assert jnp.allclose(out_w, ref_w, atol=1e-6, rtol=1e-6)

    # ---- Case 3: size not a multiple of 128 (exercises the minimal-pad path) ----
    x_odd = jax.random.normal(jax.random.PRNGKey(2), (3, 5, 7), dtype=jnp.float32)
    out_odd = jax.block_until_ready(parametric_relu(x_odd, thresh, neg_slope, pos_slope))
    ref_odd = _reference(x_odd, thresh, neg_slope, pos_slope)
    assert jnp.allclose(out_odd, ref_odd, atol=1e-6, rtol=1e-6)

    print("KERNEL_OK")
</pallas_src>

<mosaic_0001>
module attributes {stable_mosaic.version = 11 : i64} {
  func.func @_prelu_kernel_scalar(%arg0: i32, %arg1: memref<8x256xf32, #tpu.memory_space<vmem>>, %arg2: memref<3xf32, #tpu.memory_space<smem>>, %arg3: memref<8x256xf32, #tpu.memory_space<vmem>>) attributes {dimension_semantics = [#tpu.dimension_semantics<parallel>], iteration_bounds = array<i64: 1>, scalar_prefetch = 0 : i64, scratch_operands = 0 : i64, tpu.core_type = #tpu.core_type<tc>, window_params = [{transform_indices = @transform_0, window_bounds = array<i64: 8, 256>}, {transform_indices = @transform_1, window_bounds = array<i64: 3>}, {transform_indices = @transform_2, window_bounds = array<i64: 8, 256>}]} {
    %c0 = arith.constant 0 : index
    %c0_0 = arith.constant 0 : index
    %0 = vector.load %arg1[%c0, %c0_0] : memref<8x256xf32, #tpu.memory_space<vmem>>, vector<8x256xf32>
    %c0_1 = arith.constant 0 : index
    %1 = memref.load %arg2[%c0_1] : memref<3xf32, #tpu.memory_space<smem>>
    %2 = vector.broadcast %1 : f32 to vector<8x256xf32>
    %3 = arith.subf %0, %2 : vector<8x256xf32>
    %cst = arith.constant 0.000000e+00 : f32
    %4 = vector.broadcast %cst : f32 to vector<8x256xf32>
    %5 = arith.cmpf olt, %3, %4 : vector<8x256xf32>
    %c1 = arith.constant 1 : index
    %6 = memref.load %arg2[%c1] : memref<3xf32, #tpu.memory_space<smem>>
    %c2 = arith.constant 2 : index
    %7 = memref.load %arg2[%c2] : memref<3xf32, #tpu.memory_space<smem>>
    %8 = vector.broadcast %6 : f32 to vector<8x256xf32>
    %9 = vector.broadcast %7 : f32 to vector<8x256xf32>
    %10 = arith.select %5, %8, %9 : vector<8x256xi1>, vector<8x256xf32>
    %11 = arith.mulf %10, %3 : vector<8x256xf32>
    %c0_2 = arith.constant 0 : index
    %c0_3 = arith.constant 0 : index
    %12 = vector.load %arg3[%c0_2, %c0_3] : memref<8x256xf32, #tpu.memory_space<vmem>>, vector<8x256xf32>
    tpu.vector_store %arg3[%c0_2, %c0_3], %11 {strides = array<i32>} : memref<8x256xf32, #tpu.memory_space<vmem>>, vector<8x256xf32>,
    return
  }
  func.func @transform_0(%arg0: i32) -> (i32, i32) {
    %c0_i32 = arith.constant 0 : i32
    %c0_i32_0 = arith.constant 0 : i32
    return %arg0, %c0_i32 : i32, i32
  }
  func.func @transform_1(%arg0: i32) -> i32 {
    %c0_i32 = arith.constant 0 : i32
    %c0_i32_0 = arith.constant 0 : i32
    return %c0_i32 : i32
  }
  func.func @transform_2(%arg0: i32) -> (i32, i32) {
    %c0_i32 = arith.constant 0 : i32
    %c0_i32_0 = arith.constant 0 : i32
    return %arg0, %c0_i32 : i32, i32
  }
}

</mosaic_0001>

<bundles_post_ra>
// kernel: tpu_custom_call.1
= control target key start
LH: loop header
LB: loop body
LE: loop exit
PB: predicated region body
PF: predicated region fallthrough
CT: control target
= control target key end

     0   :  { %7 = vsyncpa [#allocation3], 0  ;;  %s161_s0 = inlined_call_operand.hbm [shape: f32[8,256], index: 0, kind: input, shape index: {}]   ;;  %s162_s1 = inlined_call_operand.vmem [shape: f32[3], index: 1, kind: input, shape index: {}]   ;;  %s163_s2 = inlined_call_operand.hbm [shape: f32[8,256], index: 2, kind: output, shape index: {}]  }
   0x1   :  { %8 = vsyncpa [#allocation5], 0 }
   0x2   :  { %9 = vsyncpa [#allocation4], 0  ;;  %s26_s11 = sshll.u32 %s162_s1, 4  ;;  %s134_s12 = smov [#allocation2]   ;;  %s27_s11 = int_to_ptr.vmem [resolvable:$true] %s26_s11 }
   0x3   :  { %s16_s13 = sshll.u32 %s134_s12, 4  ;;  %s17_s13 = int_to_ptr.vmem [resolvable:$true] %s16_s13 }
   0x4   :  { %s84_s14 = scalar_lea.vmem %s17_s13, 256  ;;  %p89_p1 = scmp.lt.s32.totalorder %s17_s13, %s17_s13 }
   0x5   :  { %p85_p0 = scmp.ne.s32.totalorder %s17_s13, %s84_s14  ;;  %p90_p2 = scmp.lt.s32.totalorder %s84_s14, %s84_s14 }
   0x7   :  { %p91_p3 = por %p90_p2, %p89_p1 }
   0x9   :  { %p92_p4 = pnand %p91_p3, %p85_p0 }
   0xb   :  { %95 = shalt.err (!%p92_p4)
}
   0xc   :  { %19 = dma.hbm_to_vmem [thread:$0]  %s161_s0, 256, %s17_s13, [#allocation3]  }
   0xd   :  { %s96_s17 = scalar_lea.vmem %s27_s11, 16  ;;  %p101_p6 = scmp.lt.s32.totalorder %s27_s11, %s27_s11 }
   0xe   :  { %p97_p5 = scmp.ne.s32.totalorder %s27_s11, %s96_s17  ;;  %p102_p7 = scmp.lt.s32.totalorder %s96_s17, %s96_s17 }
  0x10   :  { %p103_p8 = por %p102_p7, %p101_p6 }
  0x12   :  { %p104_p9 = pnand %p103_p8, %p97_p5 }
  0x14   :  { %107 = shalt.err (!%p104_p9)
}
  0x15   :  { %s135_s1 = smov [#allocation6]  }
  0x16   :  { %29 = dma.vmem_to_smem %s27_s11, 16, %s135_s1, [#allocation5]  }
  0x17   :  { %128 = dma.done.wait [#allocation3], 256  }
  0x18   :  { %129 = vsyncadd [#allocation3], 4294967040 }
  0x19   :  { %130 = dma.done.wait [#allocation5], 16  }
  0x1a   :  { %131 = vsyncadd [#allocation5], 4294967280 }
  0x1b   :  { %36 = sfence }
  0x1c   :  { %s39_s18 = sld [smem:[#allocation6]]  ;;  %v37_v0 = vld [vmem:[#allocation2] sm:$0xff]  ;;  %v38_v1 = vld [vmem:[#allocation2 + $0x8] sm:$0xff]  ;;  %s136_s0 = smov [#allocation7]  }
  0x1d   :  { %s71_s19 = sld [smem:[#allocation6 + $0x1]]  ;;  %s61_s21 = sshll.u32 %s136_s0, 4  ;;  %s62_s21 = int_to_ptr.vmem [resolvable:$true] %s61_s21 }
  0x1e   :  { %s72_s20 = sld [smem:[#allocation6 + $0x2]]  ;;  %s108_s22 = scalar_lea.vmem %s62_s21, 256 }
  0x1f   :  { %p109_p10 = scmp.ne.s32.totalorder %s62_s21, %s108_s22  ;;  %p113_p11 = scmp.lt.s32.totalorder %s62_s21, %s62_s21 }
  0x20   :  { %p114_p12 = scmp.lt.s32.totalorder %s108_s22, %s108_s22 }
  0x22   :  { %v40_v2 = vstv %s39_s18  ;;  %p115_p13 = por %p114_p12, %p113_p11 }
  0x23   :  { %v41_v3 = vsub.f32 %v37_v0, %v40_v2  ;;  %v47_v4 = vstv %s71_s19  ;;  %v42_v5 = vsub.f32 %v38_v1, %v40_v2 }
  0x24   :  { %v48_v6 = vstv %s72_s20  ;;  %p116_p0 = pnand %p115_p13, %p109_p10 }
  0x25   :  { %vm43_vm0 = vcmp.lt.f32.partialorder %v41_v3, 0.0  ;;  %vm44_vm1 = vcmp.lt.f32.partialorder %v42_v5, 0.0 }
  0x26   :  { %v49_v7 = vsel %vm43_vm0, %v47_v4, %v48_v6  ;;  %v50_v8 = vsel %vm44_vm1, %v47_v4, %v48_v6 }
  0x27   :  { %v51_v9 = vmul.f32 %v49_v7, %v41_v3  ;;  %v52_v10 = vmul.f32 %v50_v8, %v42_v5 }
  0x29   :  { %53 = vst [vmem:[#allocation7] sm:$0xff] %v51_v9  ;;  %54 = vst [vmem:[#allocation7 + $0x8] sm:$0xff] %v52_v10 }
  0x2a   :  { %119 = shalt.err (!%p116_p0)
}
  0x2b   :  { %64 = dma.vmem_to_hbm [thread:$0]  %s62_s21, 256, %s163_s2, [#allocation4]  }
  0x2c   :  { %132 = dma.done.wait [#allocation4], 256  }
  0x2d   :  { %133 = vsyncadd [#allocation4], 4294967040 }
  0x2e   :  { %68 = vsyncpa [#allocation3], 1 }
  0x2f   :  { %69 = vsyncpa [#allocation4], 1 }
  0x30   :  { %70 = vsyncpa [#allocation5], 1 }

</bundles_post_ra>
